<compile_context>
chip_gen: v7x
topology: tpu7x:2x2x1
jax: 0.10.0
libtpu: 0.0.40
codegen_flags: <defaults>
</compile_context>

<pallas_src>
import functools

import jax
import jax.numpy as jnp
from jax import lax
from jax.experimental import pallas as pl
from jax.experimental.pallas import tpu as pltpu  # noqa: F401  (TPU backend)

NEG_BIG = -1e30


def _fused_gat_kernel(adj_ref, x_ref, w_ref, ab_ref, o_ref, *,
                      f_ins, f_outs, w_offsets, ab_offsets):
    """Fused stack of GATConv(heads=1) layers. ReLU between layers, none on last.

    adj_ref : [N, N] int8 0/1 adjacency mask adj[dst, src] (self-loops included)
    x_ref   : [N, F_in0] f32 node features
    w_ref   : [F_max, sum(F_out_l + 1)]  per-layer [W_l | W_l @ att_dst_l^T],
              zero-padded to F_max rows, concatenated along columns
    ab_ref  : [2, sum(F_out_l)]  row 0 = att_src_l, row 1 = bias_l
    """
    num_layers = len(f_ins)

    # Additive mask built ONCE: 0 where edge, -1e30 where not.  Replaces the
    # per-layer select; masked entries underflow to exactly 0 in exp().
    mask_add = jnp.where(adj_ref[...].astype(jnp.int32) > 0,
                         jnp.float32(0.0), jnp.float32(NEG_BIG))

    # Load both parameter slabs once; per-layer views are static value slices.
    w_all = w_ref[...]          # [F_max, sum(F_out+1)]
    ab_all = ab_ref[...]        # [2, sum(F_out)]

    h = x_ref[...]              # [N, F_in0], f32
    for l in range(num_layers):
        f_in, f_out = f_ins[l], f_outs[l]
        wo, ao = w_offsets[l], ab_offsets[l]

        w_aug = w_all[:f_in, wo:wo + f_out + 1]          # [F_in, F_out+1]
        att_src = ab_all[0:1, ao:ao + f_out]             # [1, F_out]
        bias = ab_all[1:2, ao:ao + f_out]                # [1, F_out]

        # Single MXU matmul yields both the projection and alpha_dst:
        #   h_aug = h @ [W | W@a_dst^T]  -> [N, F_out + 1]  (bf16 in, f32 acc)
        h_aug = jnp.dot(h.astype(jnp.bfloat16), w_aug.astype(jnp.bfloat16),
                        preferred_element_type=jnp.float32)
        hh = h_aug[:, :f_out]                            # [N, F_out]
        a_dst = h_aug[:, f_out:f_out + 1]                # [N, 1] alpha_dst[i]
        hh_bf = hh.astype(jnp.bfloat16)                  # cast once, reused twice

        # alpha_src[j] = <h[j], att_src> as a row [1, N] (lands directly in the
        # lane layout needed for broadcasting over src nodes).
        a_src = lax.dot_general(att_src.astype(jnp.bfloat16), hh_bf,
                                (((1,), (1,)), ((), ())),
                                preferred_element_type=jnp.float32)

        # e[i, j] = leaky_relu(alpha_dst[i] + alpha_src[j], 0.2), masked by edge.
        scores = a_dst + a_src                           # [N_dst, N_src]
        scores = jnp.where(scores > 0, scores, 0.2 * scores) + mask_add

        # Masked softmax over source nodes (lane axis). Self-loops guarantee a
        # finite row max, so masked entries underflow to exactly 0 — no second
        # mask select needed.
        m = jnp.max(scores, axis=-1, keepdims=True)
        p = jnp.exp(scores - m)
        denom = jnp.sum(p, axis=-1, keepdims=True)
        attn = p * pl.reciprocal(denom, approx=True)     # EUP vrcp, ~free

        # Aggregate on the MXU: out[i] = sum_j attn[i, j] * h'[j] + bias.
        out = jnp.dot(attn.astype(jnp.bfloat16), hh_bf,
                      preferred_element_type=jnp.float32) + bias
        if l < num_layers - 1:                           # ReLU on all but last
            out = jnp.maximum(out, 0.0)
        h = out

    o_ref[...] = h


def _full_spec(shape):
    # Whole-array block (gridless call); index_map takes no grid args.
    return pl.BlockSpec(shape, lambda: (0,) * len(shape))


def raw_gat_encoder(x, adj_i8, params):
    """Forward of RawGATEncoder: relu(conv_in) -> relu(hidden)* -> conv_out.

    x: [N, F_in] f32, adj_i8: [N, N] int8 0/1 mask (with self-loops),
    params: dict with "conv_in", "hidden" (list), "conv_out"; each layer is
    (w [F_in,F_out], att_src [1,F_out], att_dst [1,F_out], bias [1,F_out]).
    """
    layers = [params["conv_in"], *params["hidden"], params["conv_out"]]
    f_ins = [w.shape[0] for (w, _, _, _) in layers]
    f_outs = [w.shape[1] for (w, _, _, _) in layers]
    f_in_max = max(f_ins)

    # Slab 1: per-layer w_aug = [W | W@att_dst^T], zero-padded to f_in_max rows,
    # concatenated along columns.
    w_blocks, w_offsets, col = [], [], 0
    for (w, _att_src, att_dst, _bias), f_in, f_out in zip(layers, f_ins, f_outs):
        w_aug = jnp.concatenate([w, w @ att_dst.T], axis=1)      # [f_in, f_out+1]
        w_aug = jnp.pad(w_aug, ((0, f_in_max - f_in), (0, 0)))
        w_blocks.append(w_aug)
        w_offsets.append(col)
        col += f_out + 1
    w_slab = jnp.concatenate(w_blocks, axis=1)                   # [f_in_max, sum(f_out+1)]

    # Slab 2: row 0 = att_src, row 1 = bias, concatenated along columns.
    ab_blocks, ab_offsets, col = [], [], 0
    for (_w, att_src, _att_dst, bias), f_out in zip(layers, f_outs):
        ab_blocks.append(jnp.concatenate([att_src, bias], axis=0))   # [2, f_out]
        ab_offsets.append(col)
        col += f_out
    ab_slab = jnp.concatenate(ab_blocks, axis=1)                 # [2, sum(f_out)]

    n = x.shape[0]
    f_out_last = f_outs[-1]

    kernel = functools.partial(_fused_gat_kernel,
                               f_ins=tuple(f_ins), f_outs=tuple(f_outs),
                               w_offsets=tuple(w_offsets),
                               ab_offsets=tuple(ab_offsets))
    return pl.pallas_call(
        kernel,
        out_shape=jax.ShapeDtypeStruct((n, f_out_last), jnp.float32),
        in_specs=[_full_spec(adj_i8.shape), _full_spec(x.shape),
                  _full_spec(w_slab.shape), _full_spec(ab_slab.shape)],
        out_specs=_full_spec((n, f_out_last)),
    )(adj_i8, x, w_slab, ab_slab)


def raw_gat_encoder_ref(x, adj_i8, params):
    """Pure-JAX f32 reference (PyG GATConv semantics, dense masked softmax)."""
    layers = [params["conv_in"], *params["hidden"], params["conv_out"]]
    mask = adj_i8.astype(jnp.float32) > 0
    h = x
    for l, (w, att_src, att_dst, bias) in enumerate(layers):
        hh = h @ w
        a_dst = hh @ att_dst.T                       # [N, 1]
        a_src = (hh @ att_src.T).T                   # [1, N]
        scores = a_dst + a_src
        scores = jnp.where(scores > 0, scores, 0.2 * scores)
        scores = jnp.where(mask, scores, NEG_BIG)
        attn = jax.nn.softmax(scores, axis=-1)
        out = attn @ hh + bias
        if l < len(layers) - 1:
            out = jnp.maximum(out, 0.0)
        h = out
    return h


def init_gat_params(key, f_in, f_out):
    """GATConv(heads=1) params: lin weight, att_src, att_dst, bias (glorot/zeros)."""
    kw, ks, kd = jax.random.split(key, 3)
    w_scale = (6.0 / (f_in + f_out)) ** 0.5
    a_scale = (6.0 / (1 + f_out)) ** 0.5
    w = jax.random.uniform(kw, (f_in, f_out), jnp.float32, -w_scale, w_scale)
    att_src = jax.random.uniform(ks, (1, f_out), jnp.float32, -a_scale, a_scale)
    att_dst = jax.random.uniform(kd, (1, f_out), jnp.float32, -a_scale, a_scale)
    bias = jnp.zeros((1, f_out), jnp.float32)
    return (w, att_src, att_dst, bias)


def build_adjacency(edge_index, num_nodes):
    """Dense int8 adjacency mask adj[dst, src]=1 per edge, plus self-loops."""
    src, dst = edge_index[0], edge_index[1]
    adj = jnp.zeros((num_nodes, num_nodes), jnp.int8)
    adj = adj.at[dst, src].set(jnp.int8(1))
    diag = jnp.arange(num_nodes)
    adj = adj.at[diag, diag].set(jnp.int8(1))
    return adj


if __name__ == "__main__":
    # Module hyperparameters (heads=1, hidden_layers=1, matching defaults).
    NUM_IN = 16
    CONV_DIM = 32
    HEADS = 1
    HIDDEN_LAYERS = 1
    NUM_OUT = 32                       # conv_out channels = NUM_OUT // HEADS = 32

    N_NODES = 8
    N_EDGES = 16

    key = jax.random.PRNGKey(0)
    k_x, k_e, k_in, k_hid, k_out = jax.random.split(key, 5)

    # data.x and data.edge_index
    x = jax.random.normal(k_x, (N_NODES, NUM_IN), jnp.float32)
    edge_index = jax.random.randint(k_e, (2, N_EDGES), 0, N_NODES, jnp.int32)
    adj = build_adjacency(edge_index, N_NODES)

    params = {
        "conv_in": init_gat_params(k_in, NUM_IN, HEADS * CONV_DIM),
        "hidden": [
            init_gat_params(jax.random.fold_in(k_hid, i),
                            HEADS * CONV_DIM, HEADS * CONV_DIM)
            for i in range(HIDDEN_LAYERS)
        ],
        "conv_out": init_gat_params(k_out, HEADS * CONV_DIM,
                                    HEADS * (NUM_OUT // HEADS)),
    }

    out = raw_gat_encoder(x, adj, params)
    out = jax.block_until_ready(out)
    assert out.shape == (N_NODES, NUM_OUT)
    assert bool(jnp.all(jnp.isfinite(out)))

    # Loose-tolerance check vs f32 reference (kernel uses bf16 MXU + approx recip).
    ref = raw_gat_encoder_ref(x, adj, params)
    max_diff = float(jnp.max(jnp.abs(out - ref)))
    assert max_diff < 1e-1, f"max |kernel - ref| = {max_diff}"

    print("KERNEL_OK")
</pallas_src>

<mosaic_0001>
module attributes {stable_mosaic.version = 11 : i64} {
  func.func @_fused_gat_kernel(%arg0: memref<8x8xi8, #tpu.memory_space<vmem>>, %arg1: memref<8x16xf32, #tpu.memory_space<vmem>>, %arg2: memref<32x99xf32, #tpu.memory_space<vmem>>, %arg3: memref<2x96xf32, #tpu.memory_space<vmem>>, %arg4: memref<8x32xf32, #tpu.memory_space<vmem>>) attributes {dimension_semantics = [], scalar_prefetch = 0 : i64, scratch_operands = 0 : i64, tpu.core_type = #tpu.core_type<tc>} {
    %c0 = arith.constant 0 : index
    %c0_0 = arith.constant 0 : index
    %0 = vector.load %arg0[%c0, %c0_0] : memref<8x8xi8, #tpu.memory_space<vmem>>, vector<8x8xi8>
    %1 = arith.extsi %0 : vector<8x8xi8> to vector<8x8xi32>
    %c0_i32 = arith.constant 0 : i32
    %2 = vector.broadcast %c0_i32 : i32 to vector<8x8xi32>
    %3 = arith.cmpi sgt, %1, %2 : vector<8x8xi32>
    %cst = arith.constant 0.000000e+00 : f32
    %cst_1 = arith.constant -1.000000e+30 : f32
    %4 = vector.broadcast %cst : f32 to vector<8x8xf32>
    %5 = vector.broadcast %cst_1 : f32 to vector<8x8xf32>
    %6 = arith.select %3, %4, %5 : vector<8x8xi1>, vector<8x8xf32>
    %c0_2 = arith.constant 0 : index
    %c0_3 = arith.constant 0 : index
    %7 = vector.load %arg2[%c0_2, %c0_3] : memref<32x99xf32, #tpu.memory_space<vmem>>, vector<32x99xf32>
    %c0_4 = arith.constant 0 : index
    %c0_5 = arith.constant 0 : index
    %8 = vector.load %arg3[%c0_4, %c0_5] : memref<2x96xf32, #tpu.memory_space<vmem>>, vector<2x96xf32>
    %c0_6 = arith.constant 0 : index
    %c0_7 = arith.constant 0 : index
    %9 = vector.load %arg1[%c0_6, %c0_7] : memref<8x16xf32, #tpu.memory_space<vmem>>, vector<8x16xf32>
    %10 = vector.extract_strided_slice %7 {offsets = [0, 0], sizes = [16, 33], strides = [1, 1]} : vector<32x99xf32> to vector<16x33xf32>
    %11 = vector.extract_strided_slice %8 {offsets = [0, 0], sizes = [1, 32], strides = [1, 1]} : vector<2x96xf32> to vector<1x32xf32>
    %12 = vector.extract_strided_slice %8 {offsets = [1, 0], sizes = [1, 32], strides = [1, 1]} : vector<2x96xf32> to vector<1x32xf32>
    %13 = arith.truncf %9 : vector<8x16xf32> to vector<8x16xbf16>
    %14 = arith.truncf %10 : vector<16x33xf32> to vector<16x33xbf16>
    %cst_8 = arith.constant dense<0.000000e+00> : vector<8x33xf32>
    %15 = tpu.matmul %13, %14, %cst_8 {dimension_numbers = #tpu.dot_dimension_numbers<[1], [0], [0], [1], [0, 0, 1, 1], [], []>} : vector<8x16xbf16>, vector<16x33xbf16>, vector<8x33xf32> -> vector<8x33xf32>
    %16 = vector.extract_strided_slice %15 {offsets = [0, 0], sizes = [8, 32], strides = [1, 1]} : vector<8x33xf32> to vector<8x32xf32>
    %17 = vector.extract_strided_slice %15 {offsets = [0, 32], sizes = [8, 1], strides = [1, 1]} : vector<8x33xf32> to vector<8x1xf32>
    %18 = arith.truncf %16 : vector<8x32xf32> to vector<8x32xbf16>
    %19 = arith.truncf %11 : vector<1x32xf32> to vector<1x32xbf16>
    %cst_9 = arith.constant dense<0.000000e+00> : vector<1x8xf32>
    %20 = tpu.matmul %19, %18, %cst_9 {dimension_numbers = #tpu.dot_dimension_numbers<[1], [1], [0], [0], [0, 0, 1, 0], [], []>} : vector<1x32xbf16>, vector<8x32xbf16>, vector<1x8xf32> -> vector<1x8xf32>
    %21 = vector.broadcast %17 : vector<8x1xf32> to vector<8x8xf32>
    %22 = vector.broadcast %20 : vector<1x8xf32> to vector<8x8xf32>
    %23 = arith.addf %21, %22 : vector<8x8xf32>
    %cst_10 = arith.constant 0.000000e+00 : f32
    %24 = vector.broadcast %cst_10 : f32 to vector<8x8xf32>
    %25 = arith.cmpf ogt, %23, %24 : vector<8x8xf32>
    %cst_11 = arith.constant 2.000000e-01 : f32
    %26 = vector.broadcast %cst_11 : f32 to vector<8x8xf32>
    %27 = arith.mulf %26, %23 : vector<8x8xf32>
    %28 = arith.select %25, %23, %27 : vector<8x8xi1>, vector<8x8xf32>
    %29 = arith.addf %28, %6 : vector<8x8xf32>
    %cst_12 = arith.constant dense<0xFF800000> : vector<8xf32>
    %30 = vector.multi_reduction <maximumf>, %29, %cst_12 [1] : vector<8x8xf32> to vector<8xf32>
    %31 = vector.shape_cast %30 : vector<8xf32> to vector<8x1xf32>
    %32 = vector.broadcast %31 : vector<8x1xf32> to vector<8x8xf32>
    %33 = arith.subf %29, %32 : vector<8x8xf32>
    %34 = math.exp %33 : vector<8x8xf32>
    %cst_13 = arith.constant dense<0.000000e+00> : vector<8xf32>
    %35 = vector.multi_reduction <add>, %34, %cst_13 [1] : vector<8x8xf32> to vector<8xf32>
    %36 = vector.shape_cast %35 : vector<8xf32> to vector<8x1xf32>
    %37 = tpu.reciprocal %36 {approx = true} : vector<8x1xf32> -> vector<8x1xf32>
    %38 = vector.broadcast %37 : vector<8x1xf32> to vector<8x8xf32>
    %39 = arith.mulf %34, %38 : vector<8x8xf32>
    %40 = arith.truncf %39 : vector<8x8xf32> to vector<8x8xbf16>
    %cst_14 = arith.constant dense<0.000000e+00> : vector<8x32xf32>
    %41 = tpu.matmul %40, %18, %cst_14 {dimension_numbers = #tpu.dot_dimension_numbers<[1], [0], [0], [1], [0, 0, 1, 1], [], []>} : vector<8x8xbf16>, vector<8x32xbf16>, vector<8x32xf32> -> vector<8x32xf32>
    %42 = vector.broadcast %12 : vector<1x32xf32> to vector<8x32xf32>
    %43 = arith.addf %41, %42 : vector<8x32xf32>
    %cst_15 = arith.constant 0.000000e+00 : f32
    %44 = vector.broadcast %cst_15 : f32 to vector<8x32xf32>
    %45 = arith.maximumf %43, %44 : vector<8x32xf32>
    %46 = vector.extract_strided_slice %7 {offsets = [0, 33], sizes = [32, 33], strides = [1, 1]} : vector<32x99xf32> to vector<32x33xf32>
    %47 = vector.extract_strided_slice %8 {offsets = [0, 32], sizes = [1, 32], strides = [1, 1]} : vector<2x96xf32> to vector<1x32xf32>
    %48 = vector.extract_strided_slice %8 {offsets = [1, 32], sizes = [1, 32], strides = [1, 1]} : vector<2x96xf32> to vector<1x32xf32>
    %49 = arith.truncf %45 : vector<8x32xf32> to vector<8x32xbf16>
    %50 = arith.truncf %46 : vector<32x33xf32> to vector<32x33xbf16>
    %cst_16 = arith.constant dense<0.000000e+00> : vector<8x33xf32>
    %51 = tpu.matmul %49, %50, %cst_16 {dimension_numbers = #tpu.dot_dimension_numbers<[1], [0], [0], [1], [0, 0, 1, 1], [], []>} : vector<8x32xbf16>, vector<32x33xbf16>, vector<8x33xf32> -> vector<8x33xf32>
    %52 = vector.extract_strided_slice %51 {offsets = [0, 0], sizes = [8, 32], strides = [1, 1]} : vector<8x33xf32> to vector<8x32xf32>
    %53 = vector.extract_strided_slice %51 {offsets = [0, 32], sizes = [8, 1], strides = [1, 1]} : vector<8x33xf32> to vector<8x1xf32>
    %54 = arith.truncf %52 : vector<8x32xf32> to vector<8x32xbf16>
    %55 = arith.truncf %47 : vector<1x32xf32> to vector<1x32xbf16>
    %cst_17 = arith.constant dense<0.000000e+00> : vector<1x8xf32>
    %56 = tpu.matmul %55, %54, %cst_17 {dimension_numbers = #tpu.dot_dimension_numbers<[1], [1], [0], [0], [0, 0, 1, 0], [], []>} : vector<1x32xbf16>, vector<8x32xbf16>, vector<1x8xf32> -> vector<1x8xf32>
    %57 = vector.broadcast %53 : vector<8x1xf32> to vector<8x8xf32>
    %58 = vector.broadcast %56 : vector<1x8xf32> to vector<8x8xf32>
    %59 = arith.addf %57, %58 : vector<8x8xf32>
    %cst_18 = arith.constant 0.000000e+00 : f32
    %60 = vector.broadcast %cst_18 : f32 to vector<8x8xf32>
    %61 = arith.cmpf ogt, %59, %60 : vector<8x8xf32>
    %cst_19 = arith.constant 2.000000e-01 : f32
    %62 = vector.broadcast %cst_19 : f32 to vector<8x8xf32>
    %63 = arith.mulf %62, %59 : vector<8x8xf32>
    %64 = arith.select %61, %59, %63 : vector<8x8xi1>, vector<8x8xf32>
    %65 = arith.addf %64, %6 : vector<8x8xf32>
    %cst_20 = arith.constant dense<0xFF800000> : vector<8xf32>
    %66 = vector.multi_reduction <maximumf>, %65, %cst_20 [1] : vector<8x8xf32> to vector<8xf32>
    %67 = vector.shape_cast %66 : vector<8xf32> to vector<8x1xf32>
    %68 = vector.broadcast %67 : vector<8x1xf32> to vector<8x8xf32>
    %69 = arith.subf %65, %68 : vector<8x8xf32>
    %70 = math.exp %69 : vector<8x8xf32>
    %cst_21 = arith.constant dense<0.000000e+00> : vector<8xf32>
    %71 = vector.multi_reduction <add>, %70, %cst_21 [1] : vector<8x8xf32> to vector<8xf32>
    %72 = vector.shape_cast %71 : vector<8xf32> to vector<8x1xf32>
    %73 = tpu.reciprocal %72 {approx = true} : vector<8x1xf32> -> vector<8x1xf32>
    %74 = vector.broadcast %73 : vector<8x1xf32> to vector<8x8xf32>
    %75 = arith.mulf %70, %74 : vector<8x8xf32>
    %76 = arith.truncf %75 : vector<8x8xf32> to vector<8x8xbf16>
    %cst_22 = arith.constant dense<0.000000e+00> : vector<8x32xf32>
    %77 = tpu.matmul %76, %54, %cst_22 {dimension_numbers = #tpu.dot_dimension_numbers<[1], [0], [0], [1], [0, 0, 1, 1], [], []>} : vector<8x8xbf16>, vector<8x32xbf16>, vector<8x32xf32> -> vector<8x32xf32>
    %78 = vector.broadcast %48 : vector<1x32xf32> to vector<8x32xf32>
    %79 = arith.addf %77, %78 : vector<8x32xf32>
    %cst_23 = arith.constant 0.000000e+00 : f32
    %80 = vector.broadcast %cst_23 : f32 to vector<8x32xf32>
    %81 = arith.maximumf %79, %80 : vector<8x32xf32>
    %82 = vector.extract_strided_slice %7 {offsets = [0, 66], sizes = [32, 33], strides = [1, 1]} : vector<32x99xf32> to vector<32x33xf32>
    %83 = vector.extract_strided_slice %8 {offsets = [0, 64], sizes = [1, 32], strides = [1, 1]} : vector<2x96xf32> to vector<1x32xf32>
    %84 = vector.extract_strided_slice %8 {offsets = [1, 64], sizes = [1, 32], strides = [1, 1]} : vector<2x96xf32> to vector<1x32xf32>
    %85 = arith.truncf %81 : vector<8x32xf32> to vector<8x32xbf16>
    %86 = arith.truncf %82 : vector<32x33xf32> to vector<32x33xbf16>
    %cst_24 = arith.constant dense<0.000000e+00> : vector<8x33xf32>
    %87 = tpu.matmul %85, %86, %cst_24 {dimension_numbers = #tpu.dot_dimension_numbers<[1], [0], [0], [1], [0, 0, 1, 1], [], []>} : vector<8x32xbf16>, vector<32x33xbf16>, vector<8x33xf32> -> vector<8x33xf32>
    %88 = vector.extract_strided_slice %87 {offsets = [0, 0], sizes = [8, 32], strides = [1, 1]} : vector<8x33xf32> to vector<8x32xf32>
    %89 = vector.extract_strided_slice %87 {offsets = [0, 32], sizes = [8, 1], strides = [1, 1]} : vector<8x33xf32> to vector<8x1xf32>
    %90 = arith.truncf %88 : vector<8x32xf32> to vector<8x32xbf16>
    %91 = arith.truncf %83 : vector<1x32xf32> to vector<1x32xbf16>
    %cst_25 = arith.constant dense<0.000000e+00> : vector<1x8xf32>
    %92 = tpu.matmul %91, %90, %cst_25 {dimension_numbers = #tpu.dot_dimension_numbers<[1], [1], [0], [0], [0, 0, 1, 0], [], []>} : vector<1x32xbf16>, vector<8x32xbf16>, vector<1x8xf32> -> vector<1x8xf32>
    %93 = vector.broadcast %89 : vector<8x1xf32> to vector<8x8xf32>
    %94 = vector.broadcast %92 : vector<1x8xf32> to vector<8x8xf32>
    %95 = arith.addf %93, %94 : vector<8x8xf32>
    %cst_26 = arith.constant 0.000000e+00 : f32
    %96 = vector.broadcast %cst_26 : f32 to vector<8x8xf32>
    %97 = arith.cmpf ogt, %95, %96 : vector<8x8xf32>
    %cst_27 = arith.constant 2.000000e-01 : f32
    %98 = vector.broadcast %cst_27 : f32 to vector<8x8xf32>
    %99 = arith.mulf %98, %95 : vector<8x8xf32>
    %100 = arith.select %97, %95, %99 : vector<8x8xi1>, vector<8x8xf32>
    %101 = arith.addf %100, %6 : vector<8x8xf32>
    %cst_28 = arith.constant dense<0xFF800000> : vector<8xf32>
    %102 = vector.multi_reduction <maximumf>, %101, %cst_28 [1] : vector<8x8xf32> to vector<8xf32>
    %103 = vector.shape_cast %102 : vector<8xf32> to vector<8x1xf32>
    %104 = vector.broadcast %103 : vector<8x1xf32> to vector<8x8xf32>
    %105 = arith.subf %101, %104 : vector<8x8xf32>
    %106 = math.exp %105 : vector<8x8xf32>
    %cst_29 = arith.constant dense<0.000000e+00> : vector<8xf32>
    %107 = vector.multi_reduction <add>, %106, %cst_29 [1] : vector<8x8xf32> to vector<8xf32>
    %108 = vector.shape_cast %107 : vector<8xf32> to vector<8x1xf32>
    %109 = tpu.reciprocal %108 {approx = true} : vector<8x1xf32> -> vector<8x1xf32>
    %110 = vector.broadcast %109 : vector<8x1xf32> to vector<8x8xf32>
    %111 = arith.mulf %106, %110 : vector<8x8xf32>
    %112 = arith.truncf %111 : vector<8x8xf32> to vector<8x8xbf16>
    %cst_30 = arith.constant dense<0.000000e+00> : vector<8x32xf32>
    %113 = tpu.matmul %112, %90, %cst_30 {dimension_numbers = #tpu.dot_dimension_numbers<[1], [0], [0], [1], [0, 0, 1, 1], [], []>} : vector<8x8xbf16>, vector<8x32xbf16>, vector<8x32xf32> -> vector<8x32xf32>
    %114 = vector.broadcast %84 : vector<1x32xf32> to vector<8x32xf32>
    %115 = arith.addf %113, %114 : vector<8x32xf32>
    %c0_31 = arith.constant 0 : index
    %c0_32 = arith.constant 0 : index
    %116 = vector.load %arg4[%c0_31, %c0_32] : memref<8x32xf32, #tpu.memory_space<vmem>>, vector<8x32xf32>
    tpu.vector_store %arg4[%c0_31, %c0_32], %115 {strides = array<i32>} : memref<8x32xf32, #tpu.memory_space<vmem>>, vector<8x32xf32>,
    return
  }
}

</mosaic_0001>

<bundles_post_ra>
// kernel: tpu_custom_call.1
= control target key start
LH: loop header
LB: loop body
LE: loop exit
PB: predicated region body
PF: predicated region fallthrough
CT: control target
= control target key end

     0   :  { %9 = vsyncpa [#allocation3], 0  ;;  %s990_s0 = inlined_call_operand.hbm [shape: s8[8,8], index: 0, kind: input, shape index: {}]   ;;  %s991_s1 = inlined_call_operand.hbm [shape: f32[8,16], index: 1, kind: input, shape index: {}]   ;;  %s992_s2 = inlined_call_operand.hbm [shape: f32[32,99], index: 2, kind: input, shape index: {}]   ;;  %s993_s3 = inlined_call_operand.vmem [shape: f32[2,96], index: 3, kind: input, shape index: {}]   ;;  %s994_s4 = inlined_call_operand.hbm [shape: f32[8,32], index: 4, kind: output, shape index: {}]  }
   0x1   :  { %10 = vsyncpa [#allocation6], 0 }
   0x2   :  { %11 = vsyncpa [#allocation4], 0  ;;  %s817_s15 = smov [#allocation5]   ;;  %s818_s17 = smov [#allocation2]  }
   0x3   :  { %s28_s16 = sshll.u32 %s817_s15, 4  ;;  %s18_s18 = sshll.u32 %s818_s17, 4  ;;  %s29_s16 = int_to_ptr.vmem [resolvable:$true] %s28_s16  ;;  %s19_s18 = int_to_ptr.vmem [resolvable:$true] %s18_s18 }
   0x4   :  { %s723_s21 = scalar_lea.hbm %s991_s1, 128 }
   0x5   :  { %p724_p0 = scmp.ne.s32.totalorder %s991_s1, %s723_s21  ;;  %p727_p1 = scmp.lt.u32.totalorder %s723_s21, %s991_s1 }
   0x7   :  { %p729_p2 = pnand %p727_p1, %p724_p0 }
   0x9   :  { %732 = shalt.err (!%p729_p2)
}
   0xa   :  { %s733_s26 = scalar_lea.vmem %s29_s16, 128  ;;  %p738_p4 = scmp.lt.s32.totalorder %s29_s16, %s29_s16 }
   0xb   :  { %p734_p3 = scmp.ne.s32.totalorder %s29_s16, %s733_s26  ;;  %p739_p5 = scmp.lt.s32.totalorder %s733_s26, %s733_s26 }
   0xd   :  { %p740_p6 = por %p739_p5, %p738_p4 }
   0xf   :  { %p741_p7 = pnand %p740_p6, %p734_p3 }
  0x11   :  { %744 = shalt.err (!%p741_p7)
}
  0x12   :  { %31 = dma.hbm_to_vmem [thread:$0]  %s991_s1, 128, %s29_s16, [#allocation6]  }
  0x13   :  { %s745_s5 = scalar_lea.hbm %s990_s0, 32 }
  0x14   :  { %p746_p8 = scmp.ne.s32.totalorder %s990_s0, %s745_s5  ;;  %p749_p9 = scmp.lt.u32.totalorder %s745_s5, %s990_s0 }
  0x16   :  { %p751_p10 = pnand %p749_p9, %p746_p8 }
  0x18   :  { %754 = shalt.err (!%p751_p10)
}
  0x19   :  { %s755_s10 = scalar_lea.vmem %s19_s18, 32  ;;  %p760_p12 = scmp.lt.s32.totalorder %s19_s18, %s19_s18 }
  0x1a   :  { %p756_p11 = scmp.ne.s32.totalorder %s19_s18, %s755_s10  ;;  %p761_p13 = scmp.lt.s32.totalorder %s755_s10, %s755_s10 }
  0x1c   :  { %p762_p0 = por %p761_p13, %p760_p12 }
  0x1e   :  { %p763_p1 = pnand %p762_p0, %p756_p11 }
  0x20   :  { %766 = shalt.err (!%p763_p1)
}
  0x21   :  { %21 = dma.hbm_to_vmem [thread:$0]  %s990_s0, 32, %s19_s18, [#allocation3]  }
  0x22   :  { %s819_s12 = smov [#allocation7]   ;;  %s767_s16 = scalar_lea.hbm %s992_s2, 512 }
  0x23   :  { %s37_s13 = sshll.u32 %s819_s12, 4  ;;  %p768_p2 = scmp.ne.s32.totalorder %s992_s2, %s767_s16  ;;  %s38_s13 = int_to_ptr.vmem [resolvable:$true] %s37_s13 }
  0x24   :  { %p771_p3 = scmp.lt.u32.totalorder %s767_s16, %s992_s2 }
  0x26   :  { %p773_p4 = pnand %p771_p3, %p768_p2 }
  0x28   :  { %776 = shalt.err (!%p773_p4)
}
  0x29   :  { %s777_s22 = scalar_lea.vmem %s38_s13, 512  ;;  %p782_p6 = scmp.lt.s32.totalorder %s38_s13, %s38_s13 }
  0x2a   :  { %p778_p5 = scmp.ne.s32.totalorder %s38_s13, %s777_s22  ;;  %p783_p7 = scmp.lt.s32.totalorder %s777_s22, %s777_s22 }
  0x2c   :  { %p784_p8 = por %p783_p7, %p782_p6 }
  0x2e   :  { %p785_p9 = pnand %p784_p8, %p778_p5 }
  0x30   :  { %788 = shalt.err (!%p785_p9)
}
  0x31   :  { %s820_s0 = smov 128   ;;  %s821_s18 = smov 8  }
  0x32   :  { %43 = dma.hbm_to_vmem [thread:$0]  %s992_s2, 512, %s38_s13, [#allocation6], %s820_s0, %s820_s0, %s821_s18  }
  0x33   :  { %811 = dma.done.wait [#allocation3], 32  }
  0x34   :  { %812 = vsyncadd [#allocation3], 4294967264 }
  0x35   :  { %813 = dma.done.wait [#allocation6], 640  }
  0x36   :  { %814 = vsyncadd [#allocation6], 4294966656  ;;  %v822_v0 = vmov 0.0   ;;  %vm823_vm0 = vmmov 0   ;;  %v824_v1 = vmov 32   ;;  %v60_v2 = vld [vmem:[#allocation7] sm:$0xff]  ;;  %v166_v16 = vlaneseq }
  0x37   :  { %637 = vmatprep.subr.bf16.mxu0 %v822_v0  ;;  %639 = vmatprep.mubr.msk.bf16.mxu0 %vm823_vm0, %v822_v0  ;;  %v61_v3 = vld [vmem:[#allocation7 + $0x8] sm:$0xff]  ;;  %v65_v4 = vld [vmem:[#allocation5] sm:$0xff]  ;;  %vm68_vm1 = vcmask 130048   ;;  %vm114_vm2 = vcmask 261120   ;;  %vm195_vm3 = vcmask 1043456   ;;  %vm175_vm6 = vcmask 64512  }
  0x38   :  { %709 = vset.pattern.permute.xlu0 %v824_v1  ;;  %643 = vmatprep.subr.bf16.mxu1 %v822_v0  ;;  %v898_v5 = vpack.c.bf16 %v61_v3, %v60_v2  ;;  %v66_v6 = vpack.c.bf16 %v65_v4, %v65_v4  ;;  %v64_v14 = vld [vmem:[%s993_s3] sm:$0x3]  ;;  %v167_v17 = vshrl.u32 %v166_v16, 7  ;;  %v825_v29 = vmov -1e+30   ;;  %v63_v40 = vld [vmem:[#allocation7 + $0x18] sm:$0xff] }
  0x39   :  { %645 = vmatprep.mubr.msk.bf16.mxu1 %vm823_vm0, %v822_v0  ;;  %710 = vset.pattern.permute.xlu1 %v824_v1  ;;  %v911_v15 = vpack.c.bf16 %v64_v14, %v64_v14  ;;  %v56_v18 = vld [vmem:[#allocation2] sm:$0x3]  ;;  %s826_s3 = smov 95   ;;  %s827_s26 = smov 96  }
  0x3a   :  { %638 = vmatpush3.bf16.msra.mxu0 %v898_v5  ;;  %v917_v19 = vsub.s32 0, %v167_v17  ;;  %v57_v20 = vunpack.c.0.s8 %v56_v18  ;;  %v62_v39 = vld [vmem:[#allocation7 + $0x10] sm:$0xff]  ;;  %v190_v48 = vsub.s32 1, %v167_v17  ;;  %s828_s27 = smov 62   ;;  %s829_s28 = smov 64  }
  0x3b   :  { %649 = vmatprep.subr.bf16.mxu0 %v822_v0  ;;  %v926_v41 = vpack.c.bf16 %v63_v40, %v62_v39  ;;  %s830_s29 = smov [#allocation8]  }
  0x3c   :  { %vm58_vm4 = vcmp.gt.s32.totalorder %v57_v20, 0  ;;  %v936_v49 = vrot.slane %v64_v14, %v190_v48  ;;  %s598_s30 = sshll.u32 %s830_s29, 4  ;;  %s599_s30 = int_to_ptr.vmem [resolvable:$true] %s598_s30 }
  0x3d   :  { %640 = vmatmul.mubr.msk.bf16.vlgmr.msra.gmra.mrb[0].mxu0 %vm68_vm1, %v66_v6  ;;  %v920_v30 = vsel %vm58_vm4, 0.0, %v825_v29  ;;  %s789_s5 = scalar_lea.vmem %s599_s30, 128  ;;  %p794_p11 = scmp.lt.s32.totalorder %s599_s30, %s599_s30 }
  0x3e   :  { %651 = vmatprep.mubr.msk.bf16.mxu0 %vm823_vm0, %v822_v0  ;;  %p790_p10 = scmp.ne.s32.totalorder %s599_s30, %s789_s5  ;;  %p795_p12 = scmp.lt.s32.totalorder %s789_s5, %s789_s5 }
  0x40   :  { %p796_p13 = por %p795_p12, %p794_p11 }
  0x42   :  { %p797_p0 = pnand %p796_p13, %p790_p10 }
 0x110   :  { %v106_v7 = vpop.f32.mrb[0].mxu0 }
 0x111   :  { %v112_v8 = vpack.c.bf16 %v106_v7, %v106_v7  ;;  %163 = vperm.xlu0 %709, %v106_v7   ;;  %v641_v9 = vpop.f32.mrb[1].mxu0 }
 0x112   :  { %v109_v10 = vpop.f32.mrb[2].mxu0 }
 0x113   :  { %v642_v11 = vpop.f32.mrb[3].mxu0  ;;  %v119_v12 = vsel %vm114_vm2, %v112_v8, 0  ;;  %v196_v13 = vsel %vm195_vm3, %v112_v8, 0 }
 0x114   :  { %644 = vmatpush3.bf16.xpose.msra.mxu1 %v119_v12  ;;  %650 = vmatpush3.bf16.msra.mxu0 %v196_v13 }
 0x115   :  { %655 = vmatprep.subr.bf16.mxu1 %v822_v0  ;;  %663 = vmatprep.subr.bf16.mxu0 %v822_v0 }
 0x11b   :  { %646 = vmatmul.mubr.msk.bf16.vlgmr.msra.gmra.mrb[0].mxu1 %vm114_vm2, %v911_v15 }
 0x11c   :  { %659 = vmatprep.mubr.msk.bf16.mxu1 %vm823_vm0, %v822_v0 }
 0x190   :  { %v164_v24 = vpop.permute.xlu0 %163 }
 0x1ee   :  { %v155_v21 = vpop.f32.mrb[0].mxu1 }
 0x1ef   :  { %v169_v22 = vrot.slane %v155_v21, %v917_v19  ;;  %v647_v23 = vpop.f32.mrb[1].mxu1 }
 0x1f0   :  { %v158_v25 = vpop.f32.mrb[2].mxu1 }
 0x1f1   :  { %v170_v26 = vadd.f32 %v169_v22, %v164_v24  ;;  %v648_v27 = vpop.f32.mrb[3].mxu1 }
 0x1f3   :  { %v172_v28 = vmul.f32 0.2, %v170_v26  ;;  %vm171_vm5 = vcmp.gt.f32.partialorder %v170_v26, 0.0 }
 0x1f5   :  { %v173_v31 = vsel %vm171_vm5, %v170_v26, %v172_v28 }
 0x1f6   :  { %v174_v32 = vadd.f32 %v173_v31, %v920_v30 }
 0x1f8   :  { %v176_v33 = vsel %vm175_vm6, %v174_v32, -inf }
 0x1f9   :  { %177 = vmax.xlane.f32.xlu0 %v176_v33 }
 0x286   :  { %v178_v34 = vpop.xlane.xlu0 %177 }
 0x287   :  { %v179_v35 = vsub.f32 %v174_v32, %v178_v34 }
 0x289   :  { %v180_v36 = vmul.f32 1.442695, %v179_v35 }
 0x28b   :  { %711 = vpow2.f32 %v180_v36 }
 0x295   :  { %v712_v37 = vpop.eup %711 }
 0x296   :  { %v182_v38 = vsel %vm175_vm6, %v712_v37, 0.0 }
 0x297   :  { %183 = vadd.xlane.f32.xlu1 %v182_v38 }
 0x2a8   :  { %243 = vrot.lane.b32.xlu1 %v898_v5, %s826_s3 }
 0x2ac   :  { %245 = vrot.lane.b32.xlu1 %v926_v41, %s826_s3 }
 0x2b0   :  { %294 = vrot.lane.b32.xlu1 %v911_v15, %s827_s26 }
 0x324   :  { %v184_v42 = vpop.xlane.xlu1 %183 }
 0x325   :  { %713 = vrcp.f32 %v184_v42 }
 0x328   :  { %v244_v43 = vpop.permute.xlu1 %243 }
 0x329   :  { %656 = vmatpush3.bf16.msra.mxu1 %v244_v43 }
 0x32a   :  { %657 = vmatprep.subr.bf16.mxu1 %v822_v0 }
 0x32c   :  { %v246_v47 = vpop.permute.xlu1 %245 }
 0x32d   :  { %658 = vmatpush3.bf16.msra.mxu1 %v246_v47 }
 0x32e   :  { %669 = vmatprep.subr.bf16.mxu1 %v822_v0 }
 0x32f   :  { %v714_v44 = vpop.eup %713 }
 0x330   :  { %v186_v45 = vmul.f32 %v714_v44, %v712_v37  ;;  %v295_v1 = vpop.permute.xlu1 %294 }
 0x332   :  { %v187_v46 = vpack.c.bf16 %v186_v45, %v186_v45 }
 0x334   :  { %652 = vmatmul.mubr.msk.bf16.vlgmr.msra.gmra.mrb[4].mxu0 %vm175_vm6, %v187_v46 }
 0x335   :  { %665 = vmatprep.mubr.msk.bf16.mxu0 %vm823_vm0, %v822_v0 }
 0x407   :  { %v232_v50 = vpop.f32.mrb[4].mxu0 }
 0x408   :  { %v233_v51 = vadd.f32 %v232_v50, %v936_v49  ;;  %v653_v52 = vpop.f32.mrb[5].mxu0 }
 0x409   :  { %v235_v53 = vpop.f32.mrb[6].mxu0 }
 0x40a   :  { %v238_v54 = vmax.f32 %v233_v51, 0.0  ;;  %v654_v55 = vpop.f32.mrb[7].mxu0 }
 0x40c   :  { %v239_v56 = vpack.c.bf16 %v238_v54, %v238_v54 }
 0x40e   :  { %660 = vmatmul.mubr.msk.bf16.vlgmr.msra.gmra.mrb[4].mxu1 %vm114_vm2, %v239_v56 }
 0x40f   :  { %671 = vmatprep.mubr.msk.bf16.mxu1 %vm823_vm0, %v822_v0 }
 0x4e1   :  { %v286_v57 = vpop.f32.mrb[4].mxu1 }
 0x4e2   :  { %v292_v58 = vpack.c.bf16 %v286_v57, %v286_v57  ;;  %344 = vperm.xlu1 %710, %v286_v57   ;;  %v661_v59 = vpop.f32.mrb[5].mxu1 }
 0x4e3   :  { %v289_v60 = vpop.f32.mrb[6].mxu1 }
 0x4e4   :  { %v662_v61 = vpop.f32.mrb[7].mxu1  ;;  %v300_v62 = vsel %vm114_vm2, %v292_v58, 0  ;;  %v375_v63 = vsel %vm195_vm3, %v292_v58, 0 }
 0x4e5   :  { %664 = vmatpush3.bf16.xpose.msra.mxu0 %v300_v62  ;;  %670 = vmatpush3.bf16.msra.mxu1 %v375_v63 }
 0x4e6   :  { %675 = vmatprep.subr.bf16.mxu0 %v822_v0  ;;  %683 = vmatprep.subr.bf16.mxu1 %v822_v0 }
 0x4ec   :  { %666 = vmatmul.mubr.msk.bf16.vlgmr.msra.gmra.mrb[8].mxu0 %vm114_vm2, %v295_v1 }
 0x4ed   :  { %679 = vmatprep.mubr.msk.bf16.mxu0 %vm823_vm0, %v822_v0 }
 0x561   :  { %v345_v6 = vpop.permute.xlu1 %344 }
 0x5bf   :  { %v336_v2 = vpop.f32.mrb[8].mxu0 }
 0x5c0   :  { %v350_v3 = vrot.slane %v336_v2, %v917_v19  ;;  %v667_v4 = vpop.f32.mrb[9].mxu0 }
 0x5c1   :  { %v339_v7 = vpop.f32.mrb[10].mxu0 }
 0x5c2   :  { %v351_v8 = vadd.f32 %v350_v3, %v345_v6  ;;  %v668_v9 = vpop.f32.mrb[11].mxu0 }
 0x5c4   :  { %v353_v10 = vmul.f32 0.2, %v351_v8  ;;  %vm352_vm7 = vcmp.gt.f32.partialorder %v351_v8, 0.0 }
 0x5c6   :  { %v354_v11 = vsel %vm352_vm7, %v351_v8, %v353_v10 }
 0x5c7   :  { %v355_v12 = vadd.f32 %v354_v11, %v920_v30 }
 0x5c9   :  { %v356_v13 = vsel %vm175_vm6, %v355_v12, -inf }
 0x5ca   :  { %357 = vmax.xlane.f32.xlu1 %v356_v13 }
 0x657   :  { %v358_v14 = vpop.xlane.xlu1 %357 }
 0x658   :  { %v359_v16 = vsub.f32 %v355_v12, %v358_v14 }
 0x65a   :  { %v360_v17 = vmul.f32 1.442695, %v359_v16 }
 0x65c   :  { %715 = vpow2.f32 %v360_v17 }
 0x666   :  { %v716_v18 = vpop.eup %715 }
 0x667   :  { %v362_v20 = vsel %vm175_vm6, %v716_v18, 0.0 }
 0x668   :  { %363 = vadd.xlane.f32.xlu0 %v362_v20 }
 0x67e   :  { %419 = vrot.lane.b32.xlu0 %v898_v5, %s828_s27 }
 0x682   :  { %369 = vrot.lane.b32.xlu0 %v936_v49, %s827_s26 }
 0x686   :  { %421 = vrot.lane.b32.xlu0 %v926_v41, %s828_s27 }
 0x68a   :  { %469 = vrot.lane.b32.xlu0 %v911_v15, %s829_s28 }
 0x6f5   :  { %v364_v21 = vpop.xlane.xlu0 %363 }
 0x6f6   :  { %717 = vrcp.f32 %v364_v21 }
 0x6f9   :  { %v420_v22 = vpop.permute.xlu0 %419 }
 0x6fa   :  { %676 = vmatpush3.bf16.msra.mxu0 %v420_v22 }
 0x6fb   :  { %677 = vmatprep.subr.bf16.mxu0 %v822_v0 }
 0x6fd   :  { %v370_v5 = vpop.permute.xlu0 %369 }
 0x700   :  { %v718_v23 = vpop.eup %717 }
 0x701   :  { %v366_v24 = vmul.f32 %v718_v23, %v716_v18  ;;  %v422_v26 = vpop.permute.xlu0 %421 }
 0x702   :  { %678 = vmatpush3.bf16.msra.mxu0 %v422_v26 }
 0x703   :  { %v367_v25 = vpack.c.bf16 %v366_v24, %v366_v24  ;;  %689 = vmatprep.subr.bf16.mxu0 %v822_v0 }
 0x705   :  { %672 = vmatmul.mubr.msk.bf16.vlgmr.msra.gmra.mrb[8].mxu1 %vm175_vm6, %v367_v25  ;;  %v470_v41 = vpop.permute.xlu0 %469 }
 0x706   :  { %685 = vmatprep.mubr.msk.bf16.mxu1 %vm823_vm0, %v822_v0 }
 0x7d8   :  { %v411_v27 = vpop.f32.mrb[8].mxu1 }
 0x7d9   :  { %v412_v28 = vadd.f32 %v411_v27, %v370_v5  ;;  %v673_v29 = vpop.f32.mrb[9].mxu1 }
 0x7da   :  { %v414_v31 = vpop.f32.mrb[10].mxu1 }
 0x7db   :  { %v417_v32 = vmax.f32 %v412_v28, 0.0  ;;  %v674_v33 = vpop.f32.mrb[11].mxu1 }
 0x7dd   :  { %v418_v34 = vpack.c.bf16 %v417_v32, %v417_v32 }
 0x7df   :  { %680 = vmatmul.mubr.msk.bf16.vlgmr.msra.gmra.mrb[12].mxu0 %vm114_vm2, %v418_v34 }
 0x7e0   :  { %691 = vmatprep.mubr.msk.bf16.mxu0 %vm823_vm0, %v822_v0 }
 0x8b2   :  { %v462_v35 = vpop.f32.mrb[12].mxu0 }
 0x8b3   :  { %v468_v36 = vpack.c.bf16 %v462_v35, %v462_v35  ;;  %519 = vperm.xlu1 %710, %v462_v35   ;;  %v681_v37 = vpop.f32.mrb[13].mxu0 }
 0x8b4   :  { %v465_v38 = vpop.f32.mrb[14].mxu0 }
 0x8b5   :  { %v682_v39 = vpop.f32.mrb[15].mxu0  ;;  %v475_v15 = vsel %vm114_vm2, %v468_v36, 0  ;;  %v549_v40 = vsel %vm195_vm3, %v468_v36, 0 }
 0x8b6   :  { %684 = vmatpush3.bf16.xpose.msra.mxu1 %v475_v15  ;;  %690 = vmatpush3.bf16.msra.mxu0 %v549_v40 }
 0x8bd   :  { %686 = vmatmul.mubr.msk.bf16.vlgmr.msra.gmra.mrb[12].mxu1 %vm114_vm2, %v470_v41 }
 0x932   :  { %v520_v0 = vpop.permute.xlu1 %519 }
 0x990   :  { %v511_v42 = vpop.f32.mrb[12].mxu1 }
 0x991   :  { %v525_v43 = vrot.slane %v511_v42, %v917_v19  ;;  %v687_v44 = vpop.f32.mrb[13].mxu1 }
 0x992   :  { %v514_v45 = vpop.f32.mrb[14].mxu1 }
 0x993   :  { %v526_v46 = vadd.f32 %v525_v43, %v520_v0  ;;  %v688_v47 = vpop.f32.mrb[15].mxu1 }
 0x995   :  { %v528_v48 = vmul.f32 0.2, %v526_v46  ;;  %vm527_vm8 = vcmp.gt.f32.partialorder %v526_v46, 0.0 }
 0x997   :  { %v529_v50 = vsel %vm527_vm8, %v526_v46, %v528_v48 }
 0x998   :  { %v530_v51 = vadd.f32 %v529_v50, %v920_v30 }
 0x99a   :  { %v531_v52 = vsel %vm175_vm6, %v530_v51, -inf }
 0x99b   :  { %532 = vmax.xlane.f32.xlu0 %v531_v52 }
 0x9b1   :  { %543 = vrot.lane.b32.xlu0 %v936_v49, %s829_s28 }
 0xa28   :  { %v533_v53 = vpop.xlane.xlu0 %532 }
 0xa29   :  { %v534_v54 = vsub.f32 %v530_v51, %v533_v53 }
 0xa2b   :  { %v535_v55 = vmul.f32 1.442695, %v534_v54 }
 0xa2c   :  { %v544_v30 = vpop.permute.xlu0 %543 }
 0xa2d   :  { %719 = vpow2.f32 %v535_v55 }
 0xa37   :  { %v720_v19 = vpop.eup %719 }
 0xa38   :  { %v537_v56 = vsel %vm175_vm6, %v720_v19, 0.0 }
 0xa39   :  { %538 = vadd.xlane.f32.xlu1 %v537_v56 }
 0xac6   :  { %v539_v57 = vpop.xlane.xlu1 %538 }
 0xac7   :  { %721 = vrcp.f32 %v539_v57 }
 0xad1   :  { %v722_v58 = vpop.eup %721 }
 0xad2   :  { %v541_v59 = vmul.f32 %v722_v58, %v720_v19 }
 0xad4   :  { %v542_v60 = vpack.c.bf16 %v541_v59, %v541_v59 }
 0xad6   :  { %692 = vmatmul.mubr.msk.bf16.vlgmr.msra.gmra.mrb[16].mxu0 %vm175_vm6, %v542_v60 }
 0xba9   :  { %v585_v61 = vpop.f32.mrb[16].mxu0 }
 0xbaa   :  { %v586_v49 = vadd.f32 %v585_v61, %v544_v30  ;;  %v693_v62 = vpop.f32.mrb[17].mxu0 }
 0xbab   :  { %v588_v63 = vpop.f32.mrb[18].mxu0 }
 0xbac   :  { %591 = vst.msk [vmem:[#allocation8] sm:$0xff] %vm114_vm2, %v586_v49  ;;  %v694_v1 = vpop.f32.mrb[19].mxu0 }
 0xbad   :  { %800 = shalt.err (!%p797_p0)
}
 0xbae   :  { %s801_s8 = scalar_lea.hbm %s994_s4, 128 }
 0xbaf   :  { %p802_p1 = scmp.ne.s32.totalorder %s994_s4, %s801_s8  ;;  %p805_p2 = scmp.lt.u32.totalorder %s801_s8, %s994_s4 }
 0xbb1   :  { %p807_p3 = pnand %p805_p2, %p802_p1 }
 0xbb3   :  { %810 = shalt.err (!%p807_p3)
}
 0xbb4   :  { %601 = dma.vmem_to_hbm [thread:$0]  %s599_s30, 128, %s994_s4, [#allocation4]  }
 0xbb5   :  { %815 = dma.done.wait [#allocation4], 128  }
 0xbb6   :  { %816 = vsyncadd [#allocation4], 4294967168 }
 0xbb7   :  { %605 = vsyncpa [#allocation3], 1 }
 0xbb8   :  { %606 = vsyncpa [#allocation6], 1 }
 0xbb9   :  { %607 = vsyncpa [#allocation4], 1 }

</bundles_post_ra>
